<compile_context>
chip_gen: v7x
topology: tpu7x:2x2x1
jax: 0.10.0
libtpu: 0.0.40
codegen_flags: <defaults>
</compile_context>

<pallas_src>
import math
import numpy as np

import jax
import jax.numpy as jnp
from jax.experimental import pallas as pl
from jax.experimental.pallas import tpu as pltpu


# ----------------------------------------------------------------------------
# Deterministic parameter construction (mirrors kymatio filter_bank formulas)
# ----------------------------------------------------------------------------
def compute_sigma_psi(xi, Q, r=math.sqrt(0.5)):
    factor = 1.0 / math.pow(2.0, 1.0 / Q)
    term1 = (1.0 - factor) / (1.0 + factor)
    term2 = 1.0 / math.sqrt(2.0 * math.log(1.0 / r))
    return xi * term1 * term2


def _adaptive_choice_P(sigma, eps=1e-7):
    val = math.sqrt(-2.0 * (sigma ** 2) * math.log(eps))
    return int(math.ceil(val + 1))


def _periodize_filter_fourier(h_f, nperiods):
    N = h_f.shape[0] // nperiods
    return h_f.reshape(nperiods, N).mean(axis=0)


def morlet1d(N, xi, sigma, P_max=5, eps=1e-7):
    """Morlet wavelet in the Fourier domain (real-valued array of length N)."""
    P = min(_adaptive_choice_P(sigma, eps=eps), P_max)
    freqs = np.arange((1 - P) * N, P * N, dtype=np.float64) / float(N)
    freqs_low = np.fft.fftfreq(N) if P == 1 else freqs
    gabor_f = np.exp(-((freqs - xi) ** 2) / (2.0 * sigma ** 2))
    low_pass_f = np.exp(-(freqs_low ** 2) / (2.0 * sigma ** 2))
    gabor_f = _periodize_filter_fourier(gabor_f, 2 * P - 1)
    low_pass_f = _periodize_filter_fourier(low_pass_f, 2 * P - 1)
    kappa = gabor_f[0] / low_pass_f[0]
    morlet_f = gabor_f - kappa * low_pass_f
    # l1 normalization (in the time domain)
    h_real = np.fft.ifft(morlet_f)
    morlet_f = morlet_f / np.abs(h_real).sum()
    return morlet_f


def build_fused_weight(xi, T, dtype=jnp.float32):
    """One-time host precompute of the fused (2T, 2T) weight.

    Combines:
      * the unnormalized c2c DFT  W[n, k] = exp(-2*pi*i*n*k/T),
      * the complex filter psi_hat (per-output-column complex scale),
      * the interleaved cplx layout: x (M, T, 2) reshaped to (M, 2T) times this
        matrix directly yields the interleaved output (M, 2T) = (M, T, 2).

    Use dtype=jnp.bfloat16 on v6e/v7x for the bandwidth-optimized path.
    """
    sigma = compute_sigma_psi(xi, 1)
    psi_f = morlet1d(T, xi, sigma)                    # real-valued, length T
    pr = np.real(psi_f).astype(np.float64)
    pi = np.imag(psi_f).astype(np.float64)            # zero, kept for generality

    n = np.arange(T)
    ang = -2.0 * np.pi * np.outer(n, n) / float(T)
    wr = np.cos(ang)
    wi = np.sin(ang)

    # Fold psi_hat into the DFT (per output frequency k): W'[n,k] = W[n,k]*psi[k]
    wr_f = wr * pr[None, :] - wi * pi[None, :]
    wi_f = wr * pi[None, :] + wi * pr[None, :]

    # Interleave rows/cols so interleaved [re, im] inputs map to interleaved
    # [re, im] outputs with a single real matmul.
    W = np.zeros((2 * T, 2 * T), dtype=np.float64)
    W[0::2, 0::2] = wr_f      # xr -> out_re
    W[1::2, 0::2] = -wi_f     # xi -> out_re
    W[0::2, 1::2] = wi_f      # xr -> out_im
    W[1::2, 1::2] = wr_f      # xi -> out_im
    return jnp.asarray(W, dtype=dtype)


# ----------------------------------------------------------------------------
# Pallas kernel: a single fused MXU matmul per row tile
# ----------------------------------------------------------------------------
def single_wavelet_kernel(x_ref, w_ref, o_ref):
    # In-kernel cast (VPU, free slot) avoids a wrapper-side astype HBM pass
    # when the weight/compute dtype is bf16.
    x = x_ref[...].astype(w_ref.dtype)
    # (tm, 2T) @ (2T, 2T) -> (tm, 2T); DFT + filter + layout all baked into W.
    o_ref[...] = jnp.dot(x, w_ref[...],
                         preferred_element_type=jnp.float32).astype(o_ref.dtype)


def _round_up(a, b):
    return ((a + b - 1) // b) * b


def _tensorcores_per_chip():
    """2 on chips with two TensorCores (v7x; v4/v5p megacore), else 1."""
    try:
        kind = jax.devices()[0].device_kind.lower()
    except Exception:
        return 1
    if "v4" in kind or "v5p" in kind or "v5 p" in kind or "7" in kind:
        return 2
    return 1


def single_wavelet_forward(x, w_fused, out_dtype=None,
                           vmem_budget_bytes=40 << 20, tm_cap=2048):
    """x: (B, C, T, 2) cplx layout  ->  (B, C, T, 2) in the compute dtype."""
    B, C, T, two = x.shape
    assert two == 2
    twoT = 2 * T
    assert w_fused.shape == (twoT, twoT)
    M = B * C

    compute_dtype = w_fused.dtype
    out_dtype = compute_dtype if out_dtype is None else out_dtype
    x_item = jnp.dtype(x.dtype).itemsize
    w_item = jnp.dtype(compute_dtype).itemsize
    o_item = jnp.dtype(out_dtype).itemsize

    # Free, contiguous reshape: interleaved [re, im] pairs become the lane dim.
    # No astype (cast happens in-kernel), no pad (ragged last block is masked).
    x2 = x.reshape(M, twoT)

    # Constant weight: single-buffer it once double-buffering would cost real
    # VMEM (its index_map is constant, so it never re-DMAs anyway).
    w_bytes = twoT * twoT * w_item
    w_single_buffer = w_bytes > (4 << 20)
    w_resident = w_bytes * (1 if w_single_buffer else 2)
    # TODO(synk): for 2T >= ~4096 f32 the resident W alone exceeds v7x's 64 MiB
    # VMEM; add an output-column (and K) grid axis to tile W, and/or prune the
    # near-zero columns of the band-limited Morlet filter to cut FLOPs/W bytes.

    # Sub-32-bit outputs pack sublanes in pairs -> prefer 16-row alignment.
    row_align = 16 if (o_item < 4 and M >= 16) else 8

    # Largest row tile whose double-buffered x/out tiles + resident W fit the
    # VMEM budget (bigger tiles amortize the ~0.35us per-grid-step overhead).
    per_row = 2 * twoT * (x_item + o_item)          # double-buffered x + out
    avail = max(vmem_budget_bytes - w_resident, per_row * row_align)
    tm = (avail // per_row) // row_align * row_align
    tm = int(max(row_align, min(tm, tm_cap, _round_up(M, row_align))))

    # Keep both TensorCores busy on 2-core chips when there is enough work;
    # on single-core chips (v5e/v6e) splitting a full tile is pure overhead.
    if (_tensorcores_per_chip() >= 2
            and pl.cdiv(M, tm) < 2
            and _round_up(M, row_align) >= 2 * row_align):
        tm = _round_up(pl.cdiv(_round_up(M, row_align), 2), row_align)

    grid = (pl.cdiv(M, tm),)

    cost = pl.CostEstimate(
        flops=int(2 * M * twoT * twoT),                       # ~8*M*T^2
        transcendentals=0,
        bytes_accessed=int(M * twoT * (x_item + o_item) + w_bytes))

    vmem_est = w_resident + 2 * tm * twoT * (x_item + o_item)
    cp_kwargs = dict(dimension_semantics=("parallel",))
    # Default scoped-VMEM limit is 16 MiB on v5e (32 MiB on v6e/v7x): raise it
    # explicitly once our footprint approaches that, capped at v7x's 64 MiB.
    if vmem_est > (12 << 20):
        cp_kwargs["vmem_limit_bytes"] = int(min(vmem_est + (4 << 20), 64 << 20))

    if w_single_buffer:
        w_spec = pl.BlockSpec((twoT, twoT), lambda i: (0, 0),
                              pipeline_mode=pl.Buffered(1))
    else:
        w_spec = pl.BlockSpec((twoT, twoT), lambda i: (0, 0))

    out = pl.pallas_call(
        single_wavelet_kernel,
        out_shape=jax.ShapeDtypeStruct((M, twoT), out_dtype),
        grid=grid,
        in_specs=[
            pl.BlockSpec((tm, twoT), lambda i: (i, 0)),   # x rows (ragged OK)
            w_spec,                                       # fused DFT * psi_hat
        ],
        out_specs=pl.BlockSpec((tm, twoT), lambda i: (i, 0)),
        compiler_params=pltpu.CompilerParams(**cp_kwargs),
        cost_estimate=cost,
    )(x2, w_fused)

    return out.reshape(B, C, T, 2)      # free, contiguous reshape


# ----------------------------------------------------------------------------
if __name__ == "__main__":
    B, C, T = 2, 4, 128          # temporal support T (wavelet size)
    xi_center = 0.35             # center frequency of the Morlet wavelet

    key = jax.random.PRNGKey(0)
    x = jax.random.normal(key, (B, C, T, 2), dtype=jnp.float32)

    # NumPy reference (same unnormalized c2c FFT convention as fft1d_c2c).
    sigma = compute_sigma_psi(xi_center, 1)
    psi_c = np.asarray(morlet1d(T, xi_center, sigma), dtype=np.complex128)
    x_np = np.asarray(x).astype(np.float64)
    x_c = x_np[..., 0] + 1j * x_np[..., 1]
    ref = np.fft.fft(x_c, axis=-1) * psi_c
    ref_ri = np.stack([ref.real, ref.imag], axis=-1).astype(np.float32)

    # --- f32 path: reference-accuracy check ---------------------------------
    w_f32 = build_fused_weight(xi_center, T, dtype=jnp.float32)
    out_f32 = jax.block_until_ready(single_wavelet_forward(x, w_f32))
    assert out_f32.shape == (B, C, T, 2) and out_f32.dtype == jnp.float32
    np.testing.assert_allclose(np.asarray(out_f32), ref_ri, rtol=1e-2, atol=1e-2)

    # --- bf16 end-to-end path (bandwidth-optimized for v6e/v7x) -------------
    w_bf16 = build_fused_weight(xi_center, T, dtype=jnp.bfloat16)
    out_bf16 = jax.block_until_ready(single_wavelet_forward(x, w_bf16))
    assert out_bf16.shape == (B, C, T, 2) and out_bf16.dtype == jnp.bfloat16
    out_bf16_f32 = np.asarray(out_bf16.astype(jnp.float32))
    scale = float(np.max(np.abs(ref_ri)))
    max_err = float(np.max(np.abs(out_bf16_f32 - ref_ri)))
    assert max_err <= 0.03 * scale + 1e-2, (max_err, scale)

    print("KERNEL_OK")
</pallas_src>

<mosaic_0001>
module attributes {stable_mosaic.version = 11 : i64} {
  func.func @single_wavelet_kernel(%arg0: i32, %arg1: memref<8x256xf32, #tpu.memory_space<vmem>>, %arg2: memref<256x256xf32, #tpu.memory_space<vmem>>, %arg3: memref<8x256xf32, #tpu.memory_space<vmem>>) attributes {dimension_semantics = [#tpu.dimension_semantics<parallel>], iteration_bounds = array<i64: 1>, scalar_prefetch = 0 : i64, scratch_operands = 0 : i64, tpu.core_type = #tpu.core_type<tc>, window_params = [{transform_indices = @transform_0, window_bounds = array<i64: 8, 256>}, {pipeline_mode = #tpu.pipeline_mode<synchronous>, transform_indices = @transform_1, window_bounds = array<i64: 256, 256>}, {transform_indices = @transform_2, window_bounds = array<i64: 8, 256>}]} {
    %c0 = arith.constant 0 : index
    %c0_0 = arith.constant 0 : index
    %0 = vector.load %arg1[%c0, %c0_0] : memref<8x256xf32, #tpu.memory_space<vmem>>, vector<8x256xf32>
    %c0_1 = arith.constant 0 : index
    %c0_2 = arith.constant 0 : index
    %1 = vector.load %arg2[%c0_1, %c0_2] : memref<256x256xf32, #tpu.memory_space<vmem>>, vector<256x256xf32>
    %cst = arith.constant dense<0.000000e+00> : vector<8x256xf32>
    %2 = tpu.matmul %0, %1, %cst {dimension_numbers = #tpu.dot_dimension_numbers<[1], [0], [0], [1], [0, 0, 1, 1], [], []>} : vector<8x256xf32>, vector<256x256xf32>, vector<8x256xf32> -> vector<8x256xf32>
    %c0_3 = arith.constant 0 : index
    %c0_4 = arith.constant 0 : index
    %3 = vector.load %arg3[%c0_3, %c0_4] : memref<8x256xf32, #tpu.memory_space<vmem>>, vector<8x256xf32>
    tpu.vector_store %arg3[%c0_3, %c0_4], %2 {strides = array<i32>} : memref<8x256xf32, #tpu.memory_space<vmem>>, vector<8x256xf32>,
    return
  }
  func.func @transform_0(%arg0: i32) -> (i32, i32) {
    %c0_i32 = arith.constant 0 : i32
    %c0_i32_0 = arith.constant 0 : i32
    return %arg0, %c0_i32 : i32, i32
  }
  func.func @transform_1(%arg0: i32) -> (i32, i32) {
    %c0_i32 = arith.constant 0 : i32
    %c0_i32_0 = arith.constant 0 : i32
    %c0_i32_1 = arith.constant 0 : i32
    return %c0_i32, %c0_i32_0 : i32, i32
  }
  func.func @transform_2(%arg0: i32) -> (i32, i32) {
    %c0_i32 = arith.constant 0 : i32
    %c0_i32_0 = arith.constant 0 : i32
    return %arg0, %c0_i32 : i32, i32
  }
}

</mosaic_0001>

<bundles_post_ra>
// kernel: tpu_custom_call.1
= control target key start
LH: loop header
LB: loop body
LE: loop exit
PB: predicated region body
PF: predicated region fallthrough
CT: control target
= control target key end

     0   :  { %7 = vsyncpa [#allocation3], 0  ;;  %s397_s0 = inlined_call_operand.hbm [shape: f32[8,256], index: 0, kind: input, shape index: {}]   ;;  %s398_s1 = inlined_call_operand.hbm [shape: f32[256,256], index: 1, kind: input, shape index: {}]   ;;  %s399_s2 = inlined_call_operand.hbm [shape: f32[8,256], index: 2, kind: output, shape index: {}]  }
   0x1   :  { %8 = vsyncpa [#allocation6], 0 }
   0x2   :  { %9 = vsyncpa [#allocation4], 0  ;;  %s334_s9 = smov [#allocation2]   ;;  %s335_s11 = smov [#allocation5]  }
   0x3   :  { %s16_s10 = sshll.u32 %s334_s9, 4  ;;  %s25_s12 = sshll.u32 %s335_s11, 4  ;;  %s17_s10 = int_to_ptr.vmem [resolvable:$true] %s16_s10  ;;  %s354_s12 = int_to_ptr.vmem [resolvable:$true] %s25_s12 }
   0x4   :  { %s262_s15 = scalar_lea.hbm %s397_s0, 256 }
   0x5   :  { %p263_p0 = scmp.ne.s32.totalorder %s397_s0, %s262_s15  ;;  %p266_p1 = scmp.lt.u32.totalorder %s262_s15, %s397_s0 }
   0x7   :  { %p268_p2 = pnand %p266_p1, %p263_p0 }
   0x9   :  { %271 = shalt.err (!%p268_p2)
}
   0xa   :  { %s272_s20 = scalar_lea.vmem %s17_s10, 256  ;;  %p277_p4 = scmp.lt.s32.totalorder %s17_s10, %s17_s10 }
   0xb   :  { %p273_p3 = scmp.ne.s32.totalorder %s17_s10, %s272_s20  ;;  %p278_p5 = scmp.lt.s32.totalorder %s272_s20, %s272_s20 }
   0xd   :  { %p279_p6 = por %p278_p5, %p277_p4 }
   0xf   :  { %p280_p7 = pnand %p279_p6, %p273_p3 }
  0x11   :  { %283 = shalt.err (!%p280_p7)
}
  0x12   :  { %19 = dma.hbm_to_vmem [thread:$0]  %s397_s0, 256, %s17_s10, [#allocation3]  }
  0x13   :  { %s284_s25 = scalar_lea.hbm %s398_s1, 8192 }
  0x14   :  { %p285_p8 = scmp.ne.s32.totalorder %s398_s1, %s284_s25  ;;  %p288_p9 = scmp.lt.u32.totalorder %s284_s25, %s398_s1 }
  0x16   :  { %p290_p10 = pnand %p288_p9, %p285_p8 }
  0x18   :  { %293 = shalt.err (!%p290_p10)
}
  0x19   :  { %s294_s30 = scalar_lea.vmem %s354_s12, 8192  ;;  %p299_p12 = scmp.lt.s32.totalorder %s354_s12, %s354_s12 }
  0x1a   :  { %p295_p11 = scmp.ne.s32.totalorder %s354_s12, %s294_s30  ;;  %p300_p13 = scmp.lt.s32.totalorder %s294_s30, %s294_s30 }
  0x1c   :  { %p301_p0 = por %p300_p13, %p299_p12 }
  0x1e   :  { %p302_p1 = pnand %p301_p0, %p295_p11 }
  0x20   :  { %305 = shalt.err (!%p302_p1)
}
  0x21   :  { %s336_s0 = smov 256   ;;  %s337_s3 = smov 16  }
  0x22   :  { %31 = dma.hbm_to_vmem [thread:$0]  %s398_s1, 8192, %s354_s12, [#allocation6], %s336_s0, %s336_s0, %s337_s3  }
  0x23   :  { %328 = dma.done.wait [#allocation3], 256  }
  0x24   :  { %329 = vsyncadd [#allocation3], 4294967040 }
  0x25   :  { %330 = dma.done.wait [#allocation6], 8192  }
  0x26   :  { %331 = vsyncadd [#allocation6], 4294959104  ;;  %v41_v0 = vld [vmem:[#allocation5 + $0x8] sm:$0xff]  ;;  %v43_v1 = vld [vmem:[#allocation5 + $0x18] sm:$0xff]  ;;  %s338_s1 = smov [#allocation7]  }
  0x27   :  { %v40_v2 = vld [vmem:[#allocation5] sm:$0xff]  ;;  %v193_v3 = vpack.c.bf16 %v43_v1, %v41_v0  ;;  %v42_v4 = vld [vmem:[#allocation5 + $0x10] sm:$0xff]  ;;  %v45_v5 = vld [vmem:[#allocation5 + $0x28] sm:$0xff]  ;;  %s183_s6 = sshll.u32 %s338_s1, 4  ;;  %s184_s6 = int_to_ptr.vmem [resolvable:$true] %s183_s6 }
  0x28   :  { %v47_v6 = vld [vmem:[#allocation5 + $0x38] sm:$0xff]  ;;  %v195_v7 = vpack.c.bf16 %v42_v4, %v40_v2  ;;  %v44_v9 = vld [vmem:[#allocation5 + $0x20] sm:$0xff]  ;;  %v46_v10 = vld [vmem:[#allocation5 + $0x30] sm:$0xff]  ;;  %s306_s7 = scalar_lea.vmem %s184_s6, 256  ;;  %p311_p3 = scmp.lt.s32.totalorder %s184_s6, %s184_s6 }
  0x29   :  { %v197_v8 = vpack.c.bf16 %v47_v6, %v45_v5  ;;  %v49_v11 = vld [vmem:[#allocation5 + $0x48] sm:$0xff]  ;;  %194 = vmatprep.subr.bf16.mxu0 %v193_v3  ;;  %v51_v12 = vld [vmem:[#allocation5 + $0x58] sm:$0xff]  ;;  %v199_v13 = vpack.c.bf16 %v46_v10, %v44_v9  ;;  %v48_v15 = vld [vmem:[#allocation5 + $0x40] sm:$0xff]  ;;  %p307_p2 = scmp.ne.s32.totalorder %s184_s6, %s306_s7  ;;  %p312_p4 = scmp.lt.s32.totalorder %s306_s7, %s306_s7 }
  0x2a   :  { %196 = vmatpush1.bf16.msra.mxu0 %v195_v7  ;;  %v201_v14 = vpack.c.bf16 %v51_v12, %v49_v11  ;;  %v50_v16 = vld [vmem:[#allocation5 + $0x50] sm:$0xff]  ;;  %v53_v17 = vld [vmem:[#allocation5 + $0x68] sm:$0xff]  ;;  %v55_v18 = vld [vmem:[#allocation5 + $0x78] sm:$0xff] }
  0x2b   :  { %198 = vmatprep.subr.bf16.mxu0 %v197_v8  ;;  %v203_v19 = vpack.c.bf16 %v50_v16, %v48_v15  ;;  %v205_v20 = vpack.c.bf16 %v55_v18, %v53_v17  ;;  %v52_v21 = vld [vmem:[#allocation5 + $0x60] sm:$0xff]  ;;  %v54_v22 = vld [vmem:[#allocation5 + $0x70] sm:$0xff]  ;;  %v57_v23 = vld [vmem:[#allocation5 + $0x88] sm:$0xff]  ;;  %p313_p5 = por %p312_p4, %p311_p3 }
  0x2c   :  { %v59_v24 = vld [vmem:[#allocation5 + $0x98] sm:$0xff]  ;;  %v207_v25 = vpack.c.bf16 %v54_v22, %v52_v21  ;;  %v56_v27 = vld [vmem:[#allocation5 + $0x80] sm:$0xff]  ;;  %v58_v28 = vld [vmem:[#allocation5 + $0x90] sm:$0xff] }
  0x2d   :  { %v209_v26 = vpack.c.bf16 %v59_v24, %v57_v23  ;;  %v61_v29 = vld [vmem:[#allocation5 + $0xa8] sm:$0xff]  ;;  %v63_v30 = vld [vmem:[#allocation5 + $0xb8] sm:$0xff]  ;;  %v211_v31 = vpack.c.bf16 %v58_v28, %v56_v27  ;;  %v60_v33 = vld [vmem:[#allocation5 + $0xa0] sm:$0xff]  ;;  %p314_p6 = pnand %p313_p5, %p307_p2 }
  0x2e   :  { %200 = vmatpush1.bf16.msra.mxu0 %v199_v13  ;;  %v213_v32 = vpack.c.bf16 %v63_v30, %v61_v29  ;;  %v62_v34 = vld [vmem:[#allocation5 + $0xb0] sm:$0xff]  ;;  %v65_v35 = vld [vmem:[#allocation5 + $0xc8] sm:$0xff]  ;;  %v67_v36 = vld [vmem:[#allocation5 + $0xd8] sm:$0xff] }
  0x2f   :  { %202 = vmatprep.subr.bf16.mxu0 %v201_v14  ;;  %v215_v37 = vpack.c.bf16 %v62_v34, %v60_v33  ;;  %v217_v38 = vpack.c.bf16 %v67_v36, %v65_v35  ;;  %v64_v39 = vld [vmem:[#allocation5 + $0xc0] sm:$0xff]  ;;  %v66_v40 = vld [vmem:[#allocation5 + $0xd0] sm:$0xff]  ;;  %v39_v41 = vld [vmem:[#allocation2 + $0x8] sm:$0xff] }
  0x30   :  { %v69_v42 = vld [vmem:[#allocation5 + $0xe8] sm:$0xff]  ;;  %v71_v43 = vld [vmem:[#allocation5 + $0xf8] sm:$0xff]  ;;  %168 = vmatprep.mubr.f32.mxu0 %v39_v41  ;;  %v219_v44 = vpack.c.bf16 %v66_v40, %v64_v39  ;;  %v68_v46 = vld [vmem:[#allocation5 + $0xe0] sm:$0xff] }
  0x31   :  { %v221_v45 = vpack.c.bf16 %v71_v43, %v69_v42  ;;  %v70_v47 = vld [vmem:[#allocation5 + $0xf0] sm:$0xff]  ;;  %v73_v48 = vld [vmem:[#allocation5 + $0x108] sm:$0xff]  ;;  %v75_v49 = vld [vmem:[#allocation5 + $0x118] sm:$0xff] }
  0x32   :  { %204 = vmatpush1.bf16.msra.mxu0 %v203_v19  ;;  %v223_v50 = vpack.c.bf16 %v70_v47, %v68_v46  ;;  %v225_v51 = vpack.c.bf16 %v75_v49, %v73_v48  ;;  %v72_v52 = vld [vmem:[#allocation5 + $0x100] sm:$0xff]  ;;  %v74_v53 = vld [vmem:[#allocation5 + $0x110] sm:$0xff]  ;;  %v77_v54 = vld [vmem:[#allocation5 + $0x128] sm:$0xff] }
  0x33   :  { %206 = vmatprep.subr.bf16.mxu0 %v205_v20  ;;  %v79_v55 = vld [vmem:[#allocation5 + $0x138] sm:$0xff]  ;;  %v227_v56 = vpack.c.bf16 %v74_v53, %v72_v52  ;;  %v76_v58 = vld [vmem:[#allocation5 + $0x120] sm:$0xff]  ;;  %v78_v59 = vld [vmem:[#allocation5 + $0x130] sm:$0xff] }
  0x34   :  { %v229_v57 = vpack.c.bf16 %v79_v55, %v77_v54  ;;  %v81_v60 = vld [vmem:[#allocation5 + $0x148] sm:$0xff]  ;;  %v83_v61 = vld [vmem:[#allocation5 + $0x158] sm:$0xff]  ;;  %v231_v62 = vpack.c.bf16 %v78_v59, %v76_v58  ;;  %v80_v0 = vld [vmem:[#allocation5 + $0x140] sm:$0xff] }
  0x35   :  { %v233_v63 = vpack.c.bf16 %v83_v61, %v81_v60  ;;  %v82_v1 = vld [vmem:[#allocation5 + $0x150] sm:$0xff]  ;;  %v85_v2 = vld [vmem:[#allocation5 + $0x168] sm:$0xff]  ;;  %v87_v3 = vld [vmem:[#allocation5 + $0x178] sm:$0xff] }
  0x36   :  { %208 = vmatpush1.bf16.msra.mxu0 %v207_v25  ;;  %v235_v4 = vpack.c.bf16 %v82_v1, %v80_v0  ;;  %v237_v5 = vpack.c.bf16 %v87_v3, %v85_v2  ;;  %v84_v6 = vld [vmem:[#allocation5 + $0x160] sm:$0xff]  ;;  %v86_v7 = vld [vmem:[#allocation5 + $0x170] sm:$0xff]  ;;  %v89_v8 = vld [vmem:[#allocation5 + $0x188] sm:$0xff] }
  0x37   :  { %210 = vmatprep.subr.bf16.mxu0 %v209_v26  ;;  %v91_v9 = vld [vmem:[#allocation5 + $0x198] sm:$0xff]  ;;  %v239_v10 = vpack.c.bf16 %v86_v7, %v84_v6  ;;  %v88_v12 = vld [vmem:[#allocation5 + $0x180] sm:$0xff]  ;;  %v90_v13 = vld [vmem:[#allocation5 + $0x190] sm:$0xff] }
  0x38   :  { %v241_v11 = vpack.c.bf16 %v91_v9, %v89_v8  ;;  %v93_v14 = vld [vmem:[#allocation5 + $0x1a8] sm:$0xff]  ;;  %v95_v15 = vld [vmem:[#allocation5 + $0x1b8] sm:$0xff]  ;;  %v243_v16 = vpack.c.bf16 %v90_v13, %v88_v12  ;;  %v92_v18 = vld [vmem:[#allocation5 + $0x1a0] sm:$0xff] }
  0x39   :  { %v245_v17 = vpack.c.bf16 %v95_v15, %v93_v14  ;;  %v94_v19 = vld [vmem:[#allocation5 + $0x1b0] sm:$0xff]  ;;  %v97_v20 = vld [vmem:[#allocation5 + $0x1c8] sm:$0xff]  ;;  %v99_v21 = vld [vmem:[#allocation5 + $0x1d8] sm:$0xff] }
  0x3a   :  { %212 = vmatpush1.bf16.msra.mxu0 %v211_v31  ;;  %v247_v22 = vpack.c.bf16 %v94_v19, %v92_v18  ;;  %v249_v23 = vpack.c.bf16 %v99_v21, %v97_v20  ;;  %v96_v24 = vld [vmem:[#allocation5 + $0x1c0] sm:$0xff]  ;;  %v98_v25 = vld [vmem:[#allocation5 + $0x1d0] sm:$0xff]  ;;  %v101_v26 = vld [vmem:[#allocation5 + $0x1e8] sm:$0xff] }
  0x3b   :  { %214 = vmatprep.subr.bf16.mxu0 %v213_v32  ;;  %v103_v27 = vld [vmem:[#allocation5 + $0x1f8] sm:$0xff]  ;;  %v251_v28 = vpack.c.bf16 %v98_v25, %v96_v24  ;;  %v100_v30 = vld [vmem:[#allocation5 + $0x1e0] sm:$0xff]  ;;  %v102_v31 = vld [vmem:[#allocation5 + $0x1f0] sm:$0xff] }
  0x3c   :  { %v253_v29 = vpack.c.bf16 %v103_v27, %v101_v26  ;;  %v255_v32 = vpack.c.bf16 %v102_v31, %v100_v30  ;;  %v38_v33 = vld [vmem:[#allocation2] sm:$0xff] }
  0x3e   :  { %216 = vmatpush1.bf16.msra.mxu0 %v215_v37 }
  0x3f   :  { %218 = vmatprep.subr.bf16.mxu0 %v217_v38 }
  0x42   :  { %220 = vmatpush1.bf16.msra.mxu0 %v219_v44 }
  0x43   :  { %222 = vmatprep.subr.bf16.mxu0 %v221_v45 }
  0x46   :  { %224 = vmatpush1.bf16.msra.mxu0 %v223_v50 }
  0x47   :  { %226 = vmatprep.subr.bf16.mxu0 %v225_v51 }
  0x4a   :  { %228 = vmatpush1.bf16.msra.mxu0 %v227_v56 }
  0x4b   :  { %230 = vmatprep.subr.bf16.mxu0 %v229_v57 }
  0x4e   :  { %232 = vmatpush1.bf16.msra.mxu0 %v231_v62 }
  0x4f   :  { %234 = vmatprep.subr.bf16.mxu0 %v233_v63 }
  0x52   :  { %236 = vmatpush1.bf16.msra.mxu0 %v235_v4 }
  0x53   :  { %238 = vmatprep.subr.bf16.mxu0 %v237_v5 }
  0x56   :  { %240 = vmatpush1.bf16.msra.mxu0 %v239_v10 }
  0x57   :  { %242 = vmatprep.subr.bf16.mxu0 %v241_v11 }
  0x5a   :  { %244 = vmatpush1.bf16.msra.mxu0 %v243_v16 }
  0x5b   :  { %246 = vmatprep.subr.bf16.mxu0 %v245_v17 }
  0x5e   :  { %248 = vmatpush1.bf16.msra.mxu0 %v247_v22 }
  0x5f   :  { %250 = vmatprep.subr.bf16.mxu0 %v249_v23 }
  0x62   :  { %252 = vmatpush1.bf16.msra.mxu0 %v251_v28 }
  0x63   :  { %254 = vmatprep.subr.bf16.mxu0 %v253_v29 }
  0x66   :  { %256 = vmatpush1.bf16.msra.mxu0 %v255_v32 }
  0x69   :  { %169 = vmatmul.mubr.f32.vlgmr.msra.gmra.mrb[0].mxu0 %v38_v33 }
 0x13c   :  { %v170_v34 = vpop.f32.mrb[0].mxu0 }
 0x13d   :  { %175 = vst [vmem:[#allocation7] sm:$0xff] %v170_v34  ;;  %v172_v35 = vpop.f32.mrb[1].mxu0 }
 0x13e   :  { %176 = vst [vmem:[#allocation7 + $0x8] sm:$0xff] %v172_v35 }
 0x13f   :  { %317 = shalt.err (!%p314_p6)
}
 0x140   :  { %s318_s10 = scalar_lea.hbm %s399_s2, 256 }
 0x141   :  { %p319_p7 = scmp.ne.s32.totalorder %s399_s2, %s318_s10  ;;  %p322_p8 = scmp.lt.u32.totalorder %s318_s10, %s399_s2 }
 0x143   :  { %p324_p9 = pnand %p322_p8, %p319_p7 }
 0x145   :  { %327 = shalt.err (!%p324_p9)
}
 0x146   :  { %186 = dma.vmem_to_hbm [thread:$0]  %s184_s6, 256, %s399_s2, [#allocation4]  }
 0x147   :  { %332 = dma.done.wait [#allocation4], 256  }
 0x148   :  { %333 = vsyncadd [#allocation4], 4294967040 }
 0x149   :  { %190 = vsyncpa [#allocation3], 1 }
 0x14a   :  { %191 = vsyncpa [#allocation6], 1 }
 0x14b   :  { %192 = vsyncpa [#allocation4], 1 }

</bundles_post_ra>
